<compile_context>
chip_gen: v6e
topology: v6e:2x2x1
jax: 0.10.0
libtpu: 0.0.40
codegen_flags: <defaults>
</compile_context>

<pallas_src>
import jax
import jax.numpy as jnp
from jax import lax
from jax.experimental import pallas as pl
from jax.experimental.pallas import tpu as pltpu

_LANE = 128


def _spectral_mix_kernel(x_ref, w_ref, o_ref):
    """One grid step = Bblk batch elements, all (padded) modes at once.

    x_ref : (Bblk, 2*Cin, Mpad)    packed [Re; Im] spectrum rows
    w_ref : (2*Cin, 2*Cout, Mpad)  packed complex-mul weights, VMEM-resident
    o_ref : (Bblk, 2*Cout, Mpad)   packed [Re; Im] output rows
    """
    bblk = x_ref.shape[0]
    cin2 = w_ref.shape[0]
    acc_shape = o_ref.shape[1:]          # (2*Cout, Mpad)

    def per_batch(b, carry):
        xb = x_ref[b]                    # (2*Cin, Mpad) -- one dynamic load
        acc = jnp.zeros(acc_shape, jnp.float32)
        # 2*Cin is small & static -> fully unrolled; each step is a (1, Mpad)
        # sublane-broadcast MAC against a full (2*Cout, Mpad) weight slab.
        # TODO(synk): for Cin >= ~16 chunk this under lax.fori_loop / a VMEM
        # scratch accumulator to bound vreg live ranges (avoid spills).
        for j in range(cin2):
            acc = acc + xb[j:j + 1] * w_ref[j]
        o_ref[b] = acc                   # single fused (2*Cout, Mpad) store
        return carry

    lax.fori_loop(0, bblk, per_batch, 0, unroll=True)


def _choose_bblk(batch, cin2, cout2, mpad):
    """Batch elements per grid step: big DMA slabs, >=2 steps, VMEM-safe."""
    bytes_per_b = (cin2 + cout2) * mpad * 4              # x + out per element
    bblk = max(1, (2 << 20) // max(bytes_per_b, 1))      # ~2 MiB slabs
    # Double-buffered x/out must stay well under every gen's scoped default.
    bblk = min(bblk, max(1, (8 << 20) // max(2 * bytes_per_b, 1)))
    bblk = min(bblk, batch)
    if batch >= 2:
        bblk = min(bblk, -(-batch // 2))   # >= 2 grid steps (v7x: 2 TCs)
    return max(bblk, 1)


def spectral_mix_pallas(x_packed, w_packed, modes_active):
    """x_packed: (B, 2*Cin, Mpad) f32; w_packed: (2*Cin, 2*Cout, Mpad) f32.
    Returns out_packed: (B, 2*Cout, Mpad) f32 = [Re(out_ft); Im(out_ft)]."""
    B, cin2, Mpad = x_packed.shape
    cin2_w, cout2, Mpad_w = w_packed.shape
    assert cin2_w == cin2 and Mpad_w == Mpad
    assert Mpad % _LANE == 0, "mode axis must be padded to a multiple of 128"

    bblk = _choose_bblk(B, cin2, cout2, Mpad)
    n_steps = -(-B // bblk)
    Bpad = n_steps * bblk
    if Bpad != B:
        x_packed = jnp.pad(x_packed, ((0, Bpad - B), (0, 0), (0, 0)))

    x_spec = pl.BlockSpec((bblk, cin2, Mpad), lambda b: (b, 0, 0))
    o_spec = pl.BlockSpec((bblk, cout2, Mpad), lambda b: (b, 0, 0))

    x_blk_bytes = bblk * cin2 * Mpad * 4
    o_blk_bytes = bblk * cout2 * Mpad * 4
    w_bytes = cin2 * cout2 * Mpad * 4
    # Generous estimate (also covers the double-buffered-weight fallback).
    vmem_needed = 2 * w_bytes + 2 * (x_blk_bytes + o_blk_bytes) + (2 << 20)
    vmem_limit = None
    if vmem_needed > (16 << 20):           # above v5e's default scoped VMEM
        # TODO(synk): on v7x (64 MiB physical VMEM/TC) shrink bblk rather
        # than raising the limit much past ~48 MiB.
        vmem_limit = min(int(vmem_needed * 1.2), 96 << 20)

    cin = cin2 // 2
    cout = cout2 // 2
    cost = pl.CostEstimate(
        flops=8 * B * cin * cout * modes_active,      # true work, not Mpad
        transcendentals=0,
        bytes_accessed=4 * (Bpad * cin2 * Mpad + cin2 * cout2 * Mpad
                            + Bpad * cout2 * Mpad),
    )

    out_shape = jax.ShapeDtypeStruct((Bpad, cout2, Mpad), jnp.float32)

    def build(single_buffer_weights):
        # Constant index_map -> packed weights are fetched once and stay
        # resident in VMEM across the whole grid; single-buffering avoids
        # paying 2x VMEM for a block that never changes.
        if single_buffer_weights:
            w_spec = pl.BlockSpec((cin2, cout2, Mpad), lambda b: (0, 0, 0),
                                  pipeline_mode=pl.Buffered(1))
        else:
            w_spec = pl.BlockSpec((cin2, cout2, Mpad), lambda b: (0, 0, 0))
        params = dict(dimension_semantics=("parallel",))
        if vmem_limit is not None:
            params["vmem_limit_bytes"] = vmem_limit
        return pl.pallas_call(
            _spectral_mix_kernel,
            out_shape=out_shape,
            grid_spec=pltpu.PrefetchScalarGridSpec(
                num_scalar_prefetch=0,
                grid=(n_steps,),
                in_specs=[x_spec, w_spec],
                out_specs=o_spec,
            ),
            compiler_params=pltpu.CompilerParams(**params),
            cost_estimate=cost,
        )

    try:
        out = build(True)(x_packed, w_packed)
    except Exception:
        # pipeline_mode=pl.Buffered(1) unsupported on this jax version:
        # fall back to default (double-buffered) weights -- identical math.
        out = build(False)(x_packed, w_packed)

    return out[:B] if Bpad != B else out


def pack_spectral_weights(weights_real, weights_imag):
    """Pack + pad SpectralConv1d weights once (call at module init).

    (Cin, Cout, modes1) real/imag -> (2*Cin, 2*Cout, Mpad) f32 with
      row i      = [ wr[i] | wi[i] ]   (multiplies Re(x_ft[:, i]))
      row Cin+i  = [-wi[i] | wr[i] ]   (multiplies Im(x_ft[:, i]))
    so a real broadcast-MAC per packed input row yields the packed
    [Re; Im] output slab.
    """
    Cin, Cout, modes1 = weights_real.shape
    wr = weights_real.astype(jnp.float32)
    wi = weights_imag.astype(jnp.float32)
    top = jnp.concatenate([wr, wi], axis=1)          # (Cin, 2*Cout, modes1)
    bot = jnp.concatenate([-wi, wr], axis=1)         # (Cin, 2*Cout, modes1)
    w_packed = jnp.concatenate([top, bot], axis=0)   # (2*Cin, 2*Cout, modes1)
    Mpad = -(-modes1 // _LANE) * _LANE
    return jnp.pad(w_packed, ((0, 0), (0, 0), (0, Mpad - modes1)))


def spectral_conv1d(x, w_packed, modes1):
    """Forward pass of SpectralConv1d.

    x        : (B, Cin, N) float32
    w_packed : (2*Cin, 2*Cout, Mpad) float32 from pack_spectral_weights()
    returns  : (B, Cout, N) float32
    """
    B, Cin, N = x.shape
    cin2, cout2, Mpad = w_packed.shape
    assert cin2 == 2 * Cin
    Cout = cout2 // 2
    n_rfft = N // 2 + 1
    assert modes1 <= n_rfft and modes1 <= Mpad

    # FFT (glue, plain JAX).
    x_ft = jnp.fft.rfft(x, axis=-1)                 # (B, Cin, n_rfft) c64
    x_m = x_ft[:, :, :modes1]

    # Pack [Re; Im] along the channel (sublane) axis; pad modes (lane axis)
    # to Mpad.  Padded modes are zero in both x and w, so they produce the
    # zeros the module's zero-filled out_ft requires.
    x_packed = jnp.concatenate(
        [jnp.real(x_m), jnp.imag(x_m)], axis=1).astype(jnp.float32)
    x_packed = jnp.pad(x_packed, ((0, 0), (0, 0), (0, Mpad - modes1)))

    out_packed = spectral_mix_pallas(x_packed, w_packed, modes1)
    out_r = out_packed[:, :Cout, :]                 # (B, Cout, Mpad)
    out_i = out_packed[:, Cout:, :]

    # Build the full rfft spectrum: positions >= modes1 are already zero.
    if Mpad >= n_rfft:
        out_r = out_r[:, :, :n_rfft]
        out_i = out_i[:, :, :n_rfft]
    else:
        tail = ((0, 0), (0, 0), (0, n_rfft - Mpad))
        out_r = jnp.pad(out_r, tail)
        out_i = jnp.pad(out_i, tail)

    out_ft = (out_r + 1j * out_i).astype(jnp.complex64)
    return jnp.fft.irfft(out_ft, n=N, axis=-1)      # (B, Cout, N) f32


if __name__ == "__main__":
    # Small deterministic example: batch=2, in/out channels=4, N=16, modes1=8.
    B, Cin, Cout, N, modes1 = 2, 4, 4, 16, 8

    key = jax.random.PRNGKey(0)
    k_x, k_wr, k_wi = jax.random.split(key, 3)

    x = jax.random.normal(k_x, (B, Cin, N), dtype=jnp.float32)

    scale = 1.0 / (Cin * Cout)
    # PyTorch: scale * torch.rand(Cin, Cout, modes1, dtype=cdouble)
    weights_real = scale * jax.random.uniform(
        k_wr, (Cin, Cout, modes1), dtype=jnp.float32)
    weights_imag = scale * jax.random.uniform(
        k_wi, (Cin, Cout, modes1), dtype=jnp.float32)

    # Packing/padding hoisted out of the forward pass (done once at "init").
    w_packed = pack_spectral_weights(weights_real, weights_imag)

    out = spectral_conv1d(x, w_packed, modes1)
    jax.block_until_ready(out)

    # Reference check against the pure-JAX einsum path.
    x_ft = jnp.fft.rfft(x, axis=-1)[:, :, :modes1]
    w_c = (weights_real + 1j * weights_imag).astype(jnp.complex64)
    ref_modes = jnp.einsum("bix,iox->box", x_ft, w_c)
    ref_ft = jnp.zeros((B, Cout, N // 2 + 1), dtype=jnp.complex64)
    ref_ft = ref_ft.at[:, :, :modes1].set(ref_modes)
    ref = jnp.fft.irfft(ref_ft, n=N, axis=-1)

    assert out.shape == (B, Cout, N)
    assert jnp.allclose(out, ref, atol=1e-5, rtol=1e-5), "mismatch vs reference"

    print("KERNEL_OK")
</pallas_src>

<mosaic_0001>
module attributes {stable_mosaic.version = 11 : i64} {
  func.func @_spectral_mix_kernel(%arg0: i32, %arg1: memref<1x8x128xf32, #tpu.memory_space<vmem>>, %arg2: memref<8x8x128xf32, #tpu.memory_space<vmem>>, %arg3: memref<1x8x128xf32, #tpu.memory_space<vmem>>) attributes {dimension_semantics = [#tpu.dimension_semantics<parallel>], iteration_bounds = array<i64: 2>, scalar_prefetch = 0 : i64, scratch_operands = 0 : i64, tpu.core_type = #tpu.core_type<tc>, window_params = [{transform_indices = @transform_0, window_bounds = array<i64: 1, 8, 128>}, {pipeline_mode = #tpu.pipeline_mode<synchronous>, transform_indices = @transform_1, window_bounds = array<i64: 8, 8, 128>}, {transform_indices = @transform_2, window_bounds = array<i64: 1, 8, 128>}]} {
    %c0_i32 = arith.constant 0 : i32
    %0 = arith.index_cast %c0_i32 : i32 to index
    %c0 = arith.constant 0 : index
    %c0_0 = arith.constant 0 : index
    %1 = vector.load %arg1[%0, %c0, %c0_0] : memref<1x8x128xf32, #tpu.memory_space<vmem>>, vector<1x8x128xf32>
    %2 = vector.shape_cast %1 : vector<1x8x128xf32> to vector<8x128xf32>
    %cst = arith.constant 0.000000e+00 : f32
    %3 = vector.broadcast %cst : f32 to vector<8x128xf32>
    %4 = vector.extract_strided_slice %2 {offsets = [0, 0], sizes = [1, 128], strides = [1, 1]} : vector<8x128xf32> to vector<1x128xf32>
    %c0_1 = arith.constant 0 : index
    %c0_2 = arith.constant 0 : index
    %c0_3 = arith.constant 0 : index
    %5 = vector.load %arg2[%c0_1, %c0_2, %c0_3] : memref<8x8x128xf32, #tpu.memory_space<vmem>>, vector<1x8x128xf32>
    %6 = vector.shape_cast %5 : vector<1x8x128xf32> to vector<8x128xf32>
    %7 = vector.broadcast %4 : vector<1x128xf32> to vector<8x128xf32>
    %8 = arith.mulf %7, %6 : vector<8x128xf32>
    %9 = arith.addf %3, %8 : vector<8x128xf32>
    %10 = vector.extract_strided_slice %2 {offsets = [1, 0], sizes = [1, 128], strides = [1, 1]} : vector<8x128xf32> to vector<1x128xf32>
    %c1 = arith.constant 1 : index
    %c0_4 = arith.constant 0 : index
    %c0_5 = arith.constant 0 : index
    %11 = vector.load %arg2[%c1, %c0_4, %c0_5] : memref<8x8x128xf32, #tpu.memory_space<vmem>>, vector<1x8x128xf32>
    %12 = vector.shape_cast %11 : vector<1x8x128xf32> to vector<8x128xf32>
    %13 = vector.broadcast %10 : vector<1x128xf32> to vector<8x128xf32>
    %14 = arith.mulf %13, %12 : vector<8x128xf32>
    %15 = arith.addf %9, %14 : vector<8x128xf32>
    %16 = vector.extract_strided_slice %2 {offsets = [2, 0], sizes = [1, 128], strides = [1, 1]} : vector<8x128xf32> to vector<1x128xf32>
    %c2 = arith.constant 2 : index
    %c0_6 = arith.constant 0 : index
    %c0_7 = arith.constant 0 : index
    %17 = vector.load %arg2[%c2, %c0_6, %c0_7] : memref<8x8x128xf32, #tpu.memory_space<vmem>>, vector<1x8x128xf32>
    %18 = vector.shape_cast %17 : vector<1x8x128xf32> to vector<8x128xf32>
    %19 = vector.broadcast %16 : vector<1x128xf32> to vector<8x128xf32>
    %20 = arith.mulf %19, %18 : vector<8x128xf32>
    %21 = arith.addf %15, %20 : vector<8x128xf32>
    %22 = vector.extract_strided_slice %2 {offsets = [3, 0], sizes = [1, 128], strides = [1, 1]} : vector<8x128xf32> to vector<1x128xf32>
    %c3 = arith.constant 3 : index
    %c0_8 = arith.constant 0 : index
    %c0_9 = arith.constant 0 : index
    %23 = vector.load %arg2[%c3, %c0_8, %c0_9] : memref<8x8x128xf32, #tpu.memory_space<vmem>>, vector<1x8x128xf32>
    %24 = vector.shape_cast %23 : vector<1x8x128xf32> to vector<8x128xf32>
    %25 = vector.broadcast %22 : vector<1x128xf32> to vector<8x128xf32>
    %26 = arith.mulf %25, %24 : vector<8x128xf32>
    %27 = arith.addf %21, %26 : vector<8x128xf32>
    %28 = vector.extract_strided_slice %2 {offsets = [4, 0], sizes = [1, 128], strides = [1, 1]} : vector<8x128xf32> to vector<1x128xf32>
    %c4 = arith.constant 4 : index
    %c0_10 = arith.constant 0 : index
    %c0_11 = arith.constant 0 : index
    %29 = vector.load %arg2[%c4, %c0_10, %c0_11] : memref<8x8x128xf32, #tpu.memory_space<vmem>>, vector<1x8x128xf32>
    %30 = vector.shape_cast %29 : vector<1x8x128xf32> to vector<8x128xf32>
    %31 = vector.broadcast %28 : vector<1x128xf32> to vector<8x128xf32>
    %32 = arith.mulf %31, %30 : vector<8x128xf32>
    %33 = arith.addf %27, %32 : vector<8x128xf32>
    %34 = vector.extract_strided_slice %2 {offsets = [5, 0], sizes = [1, 128], strides = [1, 1]} : vector<8x128xf32> to vector<1x128xf32>
    %c5 = arith.constant 5 : index
    %c0_12 = arith.constant 0 : index
    %c0_13 = arith.constant 0 : index
    %35 = vector.load %arg2[%c5, %c0_12, %c0_13] : memref<8x8x128xf32, #tpu.memory_space<vmem>>, vector<1x8x128xf32>
    %36 = vector.shape_cast %35 : vector<1x8x128xf32> to vector<8x128xf32>
    %37 = vector.broadcast %34 : vector<1x128xf32> to vector<8x128xf32>
    %38 = arith.mulf %37, %36 : vector<8x128xf32>
    %39 = arith.addf %33, %38 : vector<8x128xf32>
    %40 = vector.extract_strided_slice %2 {offsets = [6, 0], sizes = [1, 128], strides = [1, 1]} : vector<8x128xf32> to vector<1x128xf32>
    %c6 = arith.constant 6 : index
    %c0_14 = arith.constant 0 : index
    %c0_15 = arith.constant 0 : index
    %41 = vector.load %arg2[%c6, %c0_14, %c0_15] : memref<8x8x128xf32, #tpu.memory_space<vmem>>, vector<1x8x128xf32>
    %42 = vector.shape_cast %41 : vector<1x8x128xf32> to vector<8x128xf32>
    %43 = vector.broadcast %40 : vector<1x128xf32> to vector<8x128xf32>
    %44 = arith.mulf %43, %42 : vector<8x128xf32>
    %45 = arith.addf %39, %44 : vector<8x128xf32>
    %46 = vector.extract_strided_slice %2 {offsets = [7, 0], sizes = [1, 128], strides = [1, 1]} : vector<8x128xf32> to vector<1x128xf32>
    %c7 = arith.constant 7 : index
    %c0_16 = arith.constant 0 : index
    %c0_17 = arith.constant 0 : index
    %47 = vector.load %arg2[%c7, %c0_16, %c0_17] : memref<8x8x128xf32, #tpu.memory_space<vmem>>, vector<1x8x128xf32>
    %48 = vector.shape_cast %47 : vector<1x8x128xf32> to vector<8x128xf32>
    %49 = vector.broadcast %46 : vector<1x128xf32> to vector<8x128xf32>
    %50 = arith.mulf %49, %48 : vector<8x128xf32>
    %51 = arith.addf %45, %50 : vector<8x128xf32>
    %52 = arith.index_cast %c0_i32 : i32 to index
    %c0_18 = arith.constant 0 : index
    %c0_19 = arith.constant 0 : index
    %53 = vector.load %arg3[%52, %c0_18, %c0_19] : memref<1x8x128xf32, #tpu.memory_space<vmem>>, vector<1x8x128xf32>
    %54 = vector.shape_cast %53 : vector<1x8x128xf32> to vector<8x128xf32>
    %55 = vector.shape_cast %51 : vector<8x128xf32> to vector<1x8x128xf32>
    tpu.vector_store %arg3[%52, %c0_18, %c0_19], %55 {strides = array<i32>} : memref<1x8x128xf32, #tpu.memory_space<vmem>>, vector<1x8x128xf32>,
    %c1_i32 = arith.constant 1 : i32
    return
  }
  func.func @transform_0(%arg0: i32) -> (i32, i32, i32) {
    %c0_i32 = arith.constant 0 : i32
    %c0_i32_0 = arith.constant 0 : i32
    %c0_i32_1 = arith.constant 0 : i32
    return %arg0, %c0_i32, %c0_i32_0 : i32, i32, i32
  }
  func.func @transform_1(%arg0: i32) -> (i32, i32, i32) {
    %c0_i32 = arith.constant 0 : i32
    %c0_i32_0 = arith.constant 0 : i32
    %c0_i32_1 = arith.constant 0 : i32
    %c0_i32_2 = arith.constant 0 : i32
    return %c0_i32, %c0_i32_0, %c0_i32_1 : i32, i32, i32
  }
  func.func @transform_2(%arg0: i32) -> (i32, i32, i32) {
    %c0_i32 = arith.constant 0 : i32
    %c0_i32_0 = arith.constant 0 : i32
    %c0_i32_1 = arith.constant 0 : i32
    return %arg0, %c0_i32, %c0_i32_0 : i32, i32, i32
  }
}

module attributes {stable_mosaic.version = 11 : i64} {
  func.func @_spectral_mix_kernel(%arg0: i32, %arg1: memref<1x8x128xf32, #tpu.memory_space<vmem>>, %arg2: memref<8x8x128xf32, #tpu.memory_space<vmem>>, %arg3: memref<1x8x128xf32, #tpu.memory_space<vmem>>) attributes {dimension_semantics = [#tpu.dimension_semantics<parallel>], iteration_bounds = array<i64: 2>, scalar_prefetch = 0 : i64, scratch_operands = 0 : i64, tpu.core_type = #tpu.core_type<tc>, window_params = [{transform_indices = @transform_0, window_bounds = array<i64: 1, 8, 128>}, {pipeline_mode = #tpu.pipeline_mode<synchronous>, transform_indices = @transform_1, window_bounds = array<i64: 8, 8, 128>}, {transform_indices = @transform_2, window_bounds = array<i64: 1, 8, 128>}]} {
    %c0_i32 = arith.constant 0 : i32
    %0 = arith.index_cast %c0_i32 : i32 to index
    %c0 = arith.constant 0 : index
    %c0_0 = arith.constant 0 : index
    %1 = vector.load %arg1[%0, %c0, %c0_0] : memref<1x8x128xf32, #tpu.memory_space<vmem>>, vector<1x8x128xf32>
    %2 = vector.shape_cast %1 : vector<1x8x128xf32> to vector<8x128xf32>
    %cst = arith.constant 0.000000e+00 : f32
    %3 = vector.broadcast %cst : f32 to vector<8x128xf32>
    %4 = vector.extract_strided_slice %2 {offsets = [0, 0], sizes = [1, 128], strides = [1, 1]} : vector<8x128xf32> to vector<1x128xf32>
    %c0_1 = arith.constant 0 : index
    %c0_2 = arith.constant 0 : index
    %c0_3 = arith.constant 0 : index
    %5 = vector.load %arg2[%c0_1, %c0_2, %c0_3] : memref<8x8x128xf32, #tpu.memory_space<vmem>>, vector<1x8x128xf32>
    %6 = vector.shape_cast %5 : vector<1x8x128xf32> to vector<8x128xf32>
    %7 = vector.broadcast %4 : vector<1x128xf32> to vector<8x128xf32>
    %8 = arith.mulf %7, %6 : vector<8x128xf32>
    %9 = arith.addf %3, %8 : vector<8x128xf32>
    %10 = vector.extract_strided_slice %2 {offsets = [1, 0], sizes = [1, 128], strides = [1, 1]} : vector<8x128xf32> to vector<1x128xf32>
    %c1 = arith.constant 1 : index
    %c0_4 = arith.constant 0 : index
    %c0_5 = arith.constant 0 : index
    %11 = vector.load %arg2[%c1, %c0_4, %c0_5] : memref<8x8x128xf32, #tpu.memory_space<vmem>>, vector<1x8x128xf32>
    %12 = vector.shape_cast %11 : vector<1x8x128xf32> to vector<8x128xf32>
    %13 = vector.broadcast %10 : vector<1x128xf32> to vector<8x128xf32>
    %14 = arith.mulf %13, %12 : vector<8x128xf32>
    %15 = arith.addf %9, %14 : vector<8x128xf32>
    %16 = vector.extract_strided_slice %2 {offsets = [2, 0], sizes = [1, 128], strides = [1, 1]} : vector<8x128xf32> to vector<1x128xf32>
    %c2 = arith.constant 2 : index
    %c0_6 = arith.constant 0 : index
    %c0_7 = arith.constant 0 : index
    %17 = vector.load %arg2[%c2, %c0_6, %c0_7] : memref<8x8x128xf32, #tpu.memory_space<vmem>>, vector<1x8x128xf32>
    %18 = vector.shape_cast %17 : vector<1x8x128xf32> to vector<8x128xf32>
    %19 = vector.broadcast %16 : vector<1x128xf32> to vector<8x128xf32>
    %20 = arith.mulf %19, %18 : vector<8x128xf32>
    %21 = arith.addf %15, %20 : vector<8x128xf32>
    %22 = vector.extract_strided_slice %2 {offsets = [3, 0], sizes = [1, 128], strides = [1, 1]} : vector<8x128xf32> to vector<1x128xf32>
    %c3 = arith.constant 3 : index
    %c0_8 = arith.constant 0 : index
    %c0_9 = arith.constant 0 : index
    %23 = vector.load %arg2[%c3, %c0_8, %c0_9] : memref<8x8x128xf32, #tpu.memory_space<vmem>>, vector<1x8x128xf32>
    %24 = vector.shape_cast %23 : vector<1x8x128xf32> to vector<8x128xf32>
    %25 = vector.broadcast %22 : vector<1x128xf32> to vector<8x128xf32>
    %26 = arith.mulf %25, %24 : vector<8x128xf32>
    %27 = arith.addf %21, %26 : vector<8x128xf32>
    %28 = vector.extract_strided_slice %2 {offsets = [4, 0], sizes = [1, 128], strides = [1, 1]} : vector<8x128xf32> to vector<1x128xf32>
    %c4 = arith.constant 4 : index
    %c0_10 = arith.constant 0 : index
    %c0_11 = arith.constant 0 : index
    %29 = vector.load %arg2[%c4, %c0_10, %c0_11] : memref<8x8x128xf32, #tpu.memory_space<vmem>>, vector<1x8x128xf32>
    %30 = vector.shape_cast %29 : vector<1x8x128xf32> to vector<8x128xf32>
    %31 = vector.broadcast %28 : vector<1x128xf32> to vector<8x128xf32>
    %32 = arith.mulf %31, %30 : vector<8x128xf32>
    %33 = arith.addf %27, %32 : vector<8x128xf32>
    %34 = vector.extract_strided_slice %2 {offsets = [5, 0], sizes = [1, 128], strides = [1, 1]} : vector<8x128xf32> to vector<1x128xf32>
    %c5 = arith.constant 5 : index
    %c0_12 = arith.constant 0 : index
    %c0_13 = arith.constant 0 : index
    %35 = vector.load %arg2[%c5, %c0_12, %c0_13] : memref<8x8x128xf32, #tpu.memory_space<vmem>>, vector<1x8x128xf32>
    %36 = vector.shape_cast %35 : vector<1x8x128xf32> to vector<8x128xf32>
    %37 = vector.broadcast %34 : vector<1x128xf32> to vector<8x128xf32>
    %38 = arith.mulf %37, %36 : vector<8x128xf32>
    %39 = arith.addf %33, %38 : vector<8x128xf32>
    %40 = vector.extract_strided_slice %2 {offsets = [6, 0], sizes = [1, 128], strides = [1, 1]} : vector<8x128xf32> to vector<1x128xf32>
    %c6 = arith.constant 6 : index
    %c0_14 = arith.constant 0 : index
    %c0_15 = arith.constant 0 : index
    %41 = vector.load %arg2[%c6, %c0_14, %c0_15] : memref<8x8x128xf32, #tpu.memory_space<vmem>>, vector<1x8x128xf32>
    %42 = vector.shape_cast %41 : vector<1x8x128xf32> to vector<8x128xf32>
    %43 = vector.broadcast %40 : vector<1x128xf32> to vector<8x128xf32>
    %44 = arith.mulf %43, %42 : vector<8x128xf32>
    %45 = arith.addf %39, %44 : vector<8x128xf32>
    %46 = vector.extract_strided_slice %2 {offsets = [7, 0], sizes = [1, 128], strides = [1, 1]} : vector<8x128xf32> to vector<1x128xf32>
    %c7 = arith.constant 7 : index
    %c0_16 = arith.constant 0 : index
    %c0_17 = arith.constant 0 : index
    %47 = vector.load %arg2[%c7, %c0_16, %c0_17] : memref<8x8x128xf32, #tpu.memory_space<vmem>>, vector<1x8x128xf32>
    %48 = vector.shape_cast %47 : vector<1x8x128xf32> to vector<8x128xf32>
    %49 = vector.broadcast %46 : vector<1x128xf32> to vector<8x128xf32>
    %50 = arith.mulf %49, %48 : vector<8x128xf32>
    %51 = arith.addf %45, %50 : vector<8x128xf32>
    %52 = arith.index_cast %c0_i32 : i32 to index
    %c0_18 = arith.constant 0 : index
    %c0_19 = arith.constant 0 : index
    %53 = vector.load %arg3[%52, %c0_18, %c0_19] : memref<1x8x128xf32, #tpu.memory_space<vmem>>, vector<1x8x128xf32>
    %54 = vector.shape_cast %53 : vector<1x8x128xf32> to vector<8x128xf32>
    %55 = vector.shape_cast %51 : vector<8x128xf32> to vector<1x8x128xf32>
    tpu.vector_store %arg3[%52, %c0_18, %c0_19], %55 {strides = array<i32>} : memref<1x8x128xf32, #tpu.memory_space<vmem>>, vector<1x8x128xf32>,
    %c1_i32 = arith.constant 1 : i32
    return
  }
  func.func @transform_0(%arg0: i32) -> (i32, i32, i32) {
    %c0_i32 = arith.constant 0 : i32
    %c0_i32_0 = arith.constant 0 : i32
    %c0_i32_1 = arith.constant 0 : i32
    return %arg0, %c0_i32, %c0_i32_0 : i32, i32, i32
  }
  func.func @transform_1(%arg0: i32) -> (i32, i32, i32) {
    %c0_i32 = arith.constant 0 : i32
    %c0_i32_0 = arith.constant 0 : i32
    %c0_i32_1 = arith.constant 0 : i32
    %c0_i32_2 = arith.constant 0 : i32
    return %c0_i32, %c0_i32_0, %c0_i32_1 : i32, i32, i32
  }
  func.func @transform_2(%arg0: i32) -> (i32, i32, i32) {
    %c0_i32 = arith.constant 0 : i32
    %c0_i32_0 = arith.constant 0 : i32
    %c0_i32_1 = arith.constant 0 : i32
    return %arg0, %c0_i32, %c0_i32_0 : i32, i32, i32
  }
}

</mosaic_0001>

<bundles_post_ra>
// kernel: tpu_custom_call.1
= control target key start
LH: loop header
LB: loop body
LE: loop exit
PB: predicated region body
PF: predicated region fallthrough
CT: control target
= control target key end

     0   :  { %7 = vsyncpa [#allocation3], 0  ;;  %s708_s0 = inlined_call_operand.hbm [shape: f32[2,8,128], index: 0, kind: input, shape index: {}]   ;;  %s709_s1 = inlined_call_operand.hbm [shape: f32[8,8,128], index: 1, kind: input, shape index: {}]   ;;  %s710_s2 = inlined_call_operand.hbm [shape: f32[2,8,128], index: 2, kind: output, shape index: {}]  }
   0x1   :  { %9 = vsyncpa [#allocation3 + $0x1], 0 }
   0x2   :  { %10 = vsyncpa [#allocation6], 0 }
   0x3   :  { %11 = vsyncpa [#allocation4], 0 }
   0x4   :  { %13 = vsyncpa [#allocation4 + $0x1], 0  ;;  %s550_s9 = smov 0   ;;  %s552_s10 = smov 0  }
   0x5   :  { %s554_s11 = smov 0   ;;  %s556_s12 = smov 0  }
   0x6 LB: > { %s571_s13 = sadd.s32 4294967295, %s528_s12   ;;  %s333_s14 = sadd.s32 4294967294, %s528_s12   ;;  %s528_s12 = sphi %s556_s12, %s732_s12   ;;  %s524_s11 = sphi %s554_s11, %s731_s11   ;;  %s520_s10 = sphi %s552_s10, %s730_s10   ;;  %s516_s9 = sphi %s550_s9, %s729_s9  }
   0x7   : > { %p39_p0 = scmp.ne.s32.totalorder %s520_s10, %s516_s9  ;;  %p711_p1 = scmp.eq.s32.totalorder %s571_s13, 0 }
   0x8   : > { %p90_p3 = scmp.eq.s32.totalorder %s333_s14, 1  ;;  %p334_p5 = scmp.ge.s32.totalorder %s528_s12, 1 }
   0x9   : > { %p580_p4 = por %p711_p1, %p39_p0  ;;  %p97_p7 = scmp.lt.s32.totalorder %s528_s12, 3 }
   0xa   : > { %p585_p6 = por %p90_p3, %p39_p0  ;;  %s530_s18 = smov [#allocation5]  }
   0xb   : > { %s715_s15 = scalar_select %p580_p4, 1, 0 }
   0xc   : > { %s716_s16 = scalar_select %p585_p6, 1, 0 }
   0xd   : > { %p590_p8 = pnand %p334_p5, %p97_p7  ;;  %s109_s19 = sshll.u32 %s530_s18, 4  ;;  %s110_s19 = int_to_ptr.vmem [resolvable:$true] %s109_s19 }
   0xe   : > { %s604_s21 = sadd.s32 1, %s528_s12   ;;  %s26_s22 = sadd.s32 1, %s524_s11 }
   0xf   : > { %s717_s17 = scalar_select %p590_p8, 1, 0 }
  0x10   : > { %p355_p9 = pneg %p590_p8  ;;  %s23_s23 = ssub.s32 %s528_s12, %s604_s21 }
  0x11   : > { %s417_s24 = scalar_lea.vmem %s110_s19, 1024  ;;  %p425_p5 = scmp.lt.s32.totalorder %s110_s19, %s110_s19 }
  0x12   : > { %p599_p11 = pnand %p355_p9, %p711_p1  ;;  %p418_p13 = scmp.ne.s32.totalorder %s110_s19, %s417_s24 }
  0x13   : > { %p426_p7 = scmp.lt.s32.totalorder %s417_s24, %s417_s24 }
  0x14   : > { %p408_p12 = pneg %p599_p11 }
  0x15   : > { %p427_p10 = por %p426_p7, %p425_p5 }
  0x16   : > { %p420_p0 = pnand %p418_p13, %p408_p12 }
  0x18   : > { %p421_p3 = pneg %p420_p0 }
  0x1a   : > { %p428_p2 = pnand %p427_p10, %p421_p3 }
  0x1c   : > { %431 = shalt.err (!%p428_p2)
}
  0x1d   : > { %s531_s25 = smov 128   ;;  %s532_s26 = smov 8  }
  0x1e   : > { %358 = dma.hbm_to_vmem [thread:$0]  (!%p599_p11), %s709_s1, 1024, %s110_s19, [#allocation6], %s531_s25, %s531_s25, %s532_s26  }
  0x1f   : > { %p24_p9 = scmp.eq.s32.totalorder %s23_s23, 0  ;;  %p33_p12 = scmp.ne.s32.totalorder %s524_s11, %s520_s10 }
  0x20   : > { %p34_p10 = scmp.eq.s32.totalorder %s528_s12, 0  ;;  %p368_p2 = scmp.lt.s32.totalorder %s528_s12, 2 }
  0x21   : > { %s621_s29 = scalar_select %p24_p9, %s524_s11, %s26_s22  }
  0x22   : > { %p35_p13 = por %p34_p10, %p33_p12  ;;  %p719_p0 = scmp.eq.s32.totalorder %s571_s13, 1 }
  0x23   : > { %s123_s3 = sand.u32 1, %s524_s11   ;;  %s338_s4 = sshll.u32 %s528_s12, 7 }
  0x24   : > { %p625_p3 = por %p719_p0, %p33_p12  ;;  %s337_s5 = sshll.u32 %s123_s3, 3 }
  0x25   : > { %s634_s8 = scalar_lea.hbm %s708_s0, %s338_s4  ;;  %s127_s14 = scalar_lea.vmem [#allocation2], %s337_s5 }
  0x26   : > { %s720_s30 = scalar_select %p625_p3, 1, 0 }
  0x27   : > { %s134_s18 = sshll.u32 %s127_s14, 4  ;;  %p636_p11 = pnand %p368_p2, %p35_p13  ;;  %s135_s18 = int_to_ptr.vmem [resolvable:$true] %s134_s18 }
  0x28   : > { %s124_s20 = scalar_lea.sflag [#allocation3], %s123_s3  ;;  %s432_s22 = scalar_lea.hbm %s634_s8, 128 }
  0x29   : > { %p433_p5 = scmp.ne.s32.totalorder %s634_s8, %s432_s22  ;;  %p434_p7 = pneg %p636_p11 }
  0x2a   : > { %s437_s25 = scalar_lea.hbm %s708_s0, 256  ;;  %p438_p10 = scmp.lt.s32.totalorder %s634_s8, %s708_s0 }
  0x2b   : > { %p435_p9 = pnand %p434_p7, %p433_p5  ;;  %p439_p2 = scmp.lt.s32.totalorder %s437_s25, %s432_s22 }
  0x2d   : > { %p436_p12 = pneg %p435_p9  ;;  %p440_p13 = por %p439_p2, %p438_p10 }
  0x2f   : > { %p441_p0 = pnand %p440_p13, %p436_p12 }
  0x31   : > { %444 = shalt.err (!%p441_p0)
}
  0x32   : > { %s445_s28 = scalar_lea.vmem %s135_s18, 128  ;;  %s533_s3 = smov [#allocation2]  }
  0x33   : > { %p446_p1 = scmp.ne.s32.totalorder %s135_s18, %s445_s28  ;;  %s450_s4 = sshll.u32 %s533_s3, 4  ;;  %s451_s4 = int_to_ptr.vmem [resolvable:$false] %s450_s4 }
  0x34   : > { %s452_s5 = scalar_lea.vmem %s451_s4, 256  ;;  %p453_p5 = scmp.lt.s32.totalorder %s135_s18, %s451_s4 }
  0x35   : > { %p448_p6 = pnand %p446_p1, %p434_p7  ;;  %p454_p9 = scmp.lt.s32.totalorder %s452_s5, %s445_s28 }
  0x37   : > { %p449_p3 = pneg %p448_p6  ;;  %p455_p4 = por %p454_p9, %p453_p5 }
  0x39   : > { %p456_p8 = pnand %p455_p4, %p449_p3 }
  0x3b   : > { %459 = shalt.err (!%p456_p8)
}
  0x3c   : > { %362 = dma.hbm_to_vmem [thread:$0]  (!%p636_p11), %s634_s8, 128, %s135_s18, %s124_s20  }
  0x3d   : > { %p722_p12 = scmp.ne.s32.totalorder %s717_s17, 0 }
  0x3e   : > { %s657_s6 = sand.u32 (!%p722_p12), 1, %s520_s10   ;;  %p723_p1 = scmp.ne.s32.totalorder (!%p722_p12), %s715_s15, 0 }
  0x3f   : > { %143 = sbr.rel (%p722_p12) target bundleno = 109 (0x6d), region = 28  ;;  %s340_s7 = sshll.u32 (!%p722_p12), %s657_s6, 3 }
  0x40   : > { %s146_s14 = scalar_lea.sflag (!%p722_p12), [#allocation3], %s657_s6  ;;  %s149_s22 = scalar_lea.vmem (!%p722_p12), [#allocation2], %s340_s7 }
  0x44   : > { %503 = dma.done.wait (%p723_p1), %s146_s14, 128  }
  0x45   : > { %505 = vsyncadd (%p723_p1), %s146_s14, 4294967168  ;;  %p724_p4 = scmp.eq.s32.totalorder %s571_s13, 0 }
  0x47   : > { %507 = dma.done.wait (%p724_p4), [#allocation6], 1024   ;;  %p725_p6 = pmov %p724_p4 }
  0x48   : > { %v176_v0 = vlaneseq  ;;  %v174_v7 = vld [vmem:[%s149_s22] sm:$0xff]  ;;  %v175_v8 = vld [vmem:[#allocation5] sm:$0xff]  ;;  %v183_v9 = vld [vmem:[#allocation5 + $0x8] sm:$0xff]  ;;  %s173_s15 = scalar_lea.vmem [#allocation7], %s340_s7  ;;  %s344_s8 = sshll.u32 %s571_s13, 7 }
  0x49   : > { %509 = vsyncadd (%p725_p6), [#allocation6], 4294966272  ;;  %v191_v13 = vld [vmem:[#allocation5 + $0x10] sm:$0xff]  ;;  %v199_v16 = vld [vmem:[#allocation5 + $0x18] sm:$0xff]  ;;  %s253_s17 = sshll.u32 %s173_s15, 4  ;;  %s251_s20 = scalar_lea.hbm %s710_s2, %s344_s8  ;;  %s254_s17 = int_to_ptr.vmem [resolvable:$true] %s253_s17 }
  0x4a   : > { %v177_v1 = vshrl.u32 %v176_v0, 7  ;;  %v207_v22 = vld [vmem:[#allocation5 + $0x20] sm:$0xff]  ;;  %v215_v27 = vld [vmem:[#allocation5 + $0x28] sm:$0xff]  ;;  %v223_v31 = vld [vmem:[#allocation5 + $0x30] sm:$0xff]  ;;  %s240_s23 = scalar_lea.sflag [#allocation4], %s657_s6  ;;  %s460_s24 = scalar_lea.vmem %s254_s17, 128 }
  0x4b   : > { %v231_v35 = vld [vmem:[#allocation5 + $0x38] sm:$0xff]  ;;  %p461_p8 = scmp.ne.s32.totalorder %s254_s17, %s460_s24  ;;  %p726_p3 = scmp.ne.s32.totalorder %s720_s30, 0 }
  0x4c   : > { %v178_v2 = vsub.s32 0, %v177_v1  ;;  %v186_v3 = vsub.s32 1, %v177_v1  ;;  %v194_v4 = vsub.s32 2, %v177_v1  ;;  %v202_v5 = vsub.s32 3, %v177_v1  ;;  %s534_s25 = smov [#allocation7]  }
  0x4d   : > { %v210_v6 = vsub.s32 4, %v177_v1  ;;  %v218_v10 = vsub.s32 5, %v177_v1  ;;  %v226_v17 = vsub.s32 6, %v177_v1  ;;  %v234_v26 = vsub.s32 7, %v177_v1  ;;  %p462_p11 = pnand %p461_p8, %p726_p3  ;;  %s464_s26 = sshll.u32 %s534_s25, 4  ;;  %s465_s26 = int_to_ptr.vmem [resolvable:$false] %s464_s26 }
  0x4e   : > { %v179_v11 = vrot.slane %v174_v7, %v178_v2  ;;  %v187_v12 = vrot.slane %v174_v7, %v186_v3  ;;  %v195_v14 = vrot.slane %v174_v7, %v194_v4  ;;  %v203_v15 = vrot.slane %v174_v7, %v202_v5  ;;  %s466_s27 = scalar_lea.vmem %s465_s26, 256  ;;  %p467_p10 = scmp.lt.s32.totalorder %s254_s17, %s465_s26 }
  0x4f   : > { %v211_v21 = vrot.slane %v174_v7, %v210_v6  ;;  %v219_v25 = vrot.slane %v174_v7, %v218_v10  ;;  %v227_v30 = vrot.slane %v174_v7, %v226_v17  ;;  %v235_v34 = vrot.slane %v174_v7, %v234_v26  ;;  %p463_p7 = pneg %p462_p11  ;;  %p468_p2 = scmp.lt.s32.totalorder %s466_s27, %s460_s24 }
  0x50   : > { %v180_v18 = vmul.f32 %v179_v11, %v175_v8  ;;  %v188_v19 = vmul.f32 %v187_v12, %v183_v9  ;;  %v196_v20 = vmul.f32 %v195_v14, %v191_v13  ;;  %v204_v24 = vmul.f32 %v203_v15, %v199_v16 }
  0x51   : > { %v212_v29 = vmul.f32 %v211_v21, %v207_v22  ;;  %v220_v33 = vmul.f32 %v219_v25, %v215_v27  ;;  %v228_v37 = vmul.f32 %v227_v30, %v223_v31  ;;  %v236_v39 = vmul.f32 %v235_v34, %v231_v35  ;;  %p469_p13 = por %p468_p2, %p467_p10 }
  0x52   : > { %v189_v23 = vadd.f32 %v188_v19, %v180_v18 }
  0x53   : > { %p470_p0 = pnand %p469_p13, %p463_p7 }
  0x54   : > { %v197_v28 = vadd.f32 %v196_v20, %v189_v23 }
  0x56   : > { %v205_v32 = vadd.f32 %v204_v24, %v197_v28 }
  0x58   : > { %v213_v36 = vadd.f32 %v212_v29, %v205_v32 }
  0x5a   : > { %v221_v38 = vadd.f32 %v220_v33, %v213_v36 }
  0x5c   : > { %v229_v40 = vadd.f32 %v228_v37, %v221_v38 }
  0x5e   : > { %v237_v41 = vadd.f32 %v236_v39, %v229_v40 }
  0x60   : > { %238 = vst [vmem:[%s173_s15] sm:$0xff] %v237_v41 }
  0x61   : > { %473 = shalt.err (!%p470_p0)
}
  0x62   : > { %s474_s13 = scalar_lea.hbm %s251_s20, 128  ;;  %s478_s4 = scalar_lea.hbm %s710_s2, 256 }
  0x63   : > { %p475_p5 = scmp.ne.s32.totalorder %s251_s20, %s474_s13  ;;  %p479_p1 = scmp.lt.s32.totalorder %s251_s20, %s710_s2 }
  0x64   : > { %p480_p4 = scmp.lt.s32.totalorder %s478_s4, %s474_s13 }
  0x65   : > { %p476_p9 = pnand %p475_p5, %p726_p3 }
  0x66   : > { %p481_p6 = por %p480_p4, %p479_p1 }
  0x67   : > { %p477_p12 = pneg %p476_p9 }
  0x69   : > { %p482_p8 = pnand %p481_p6, %p477_p12 }
  0x6b   : > { %485 = shalt.err (!%p482_p8)
}
  0x6c   : > { %353 = dma.vmem_to_hbm [thread:$0]  (%p726_p3), %s254_s17, 128, %s251_s20, %s240_s23  }
  0x6d PF: > { %s265_s7 = sand.u32 1, %s516_s9   ;;  %p727_p11 = scmp.ne.s32.totalorder %s716_s16, 0 }
  0x6e   : > { %p728_p7 = scmp.ge.s32.totalorder %s528_s12, 2  ;;  %s266_s14 = scalar_lea.sflag [#allocation4], %s265_s7 }
  0x70   : > { %p364_p10 = pnand %p728_p7, %p727_p11 }
  0x72   : > { %p365_p2 = pneg %p364_p10 }
  0x74   : > { %511 = dma.done.wait (%p365_p2), %s266_s14, 128  }
  0x75   : > { %513 = vsyncadd (%p365_p2), %s266_s14, 4294967168  ;;  %p16_p13 = scmp.ge.s32.totalorder %s604_s21, 4   ;;  %s729_s9 = smov %s520_s10 }
  0x76   : > { %s730_s10 = smov %s524_s11  ;;  %s731_s11 = smov %s621_s29 }
  0x77   : > { %s732_s12 = smov %s604_s21  ;;  %18 = sbr.rel (!%p16_p13) target bundleno = 6 (0x6), region = 84 }
  0x7c   :  { %271 = vsyncpa [#allocation3], 1 }
  0x7d   :  { %273 = vsyncpa [#allocation3 + $0x1], 1 }
  0x7e   :  { %274 = vsyncpa [#allocation6], 1 }
  0x7f   :  { %275 = vsyncpa [#allocation4], 1 }
  0x80   :  { %277 = vsyncpa [#allocation4 + $0x1], 1 }

// kernel: tpu_custom_call.1
= control target key start
LH: loop header
LB: loop body
LE: loop exit
PB: predicated region body
PF: predicated region fallthrough
CT: control target
= control target key end

     0   :  { %7 = vsyncpa [#allocation3], 0  ;;  %s708_s0 = inlined_call_operand.hbm [shape: f32[2,8,128], index: 0, kind: input, shape index: {}]   ;;  %s709_s1 = inlined_call_operand.hbm [shape: f32[8,8,128], index: 1, kind: input, shape index: {}]   ;;  %s710_s2 = inlined_call_operand.hbm [shape: f32[2,8,128], index: 2, kind: output, shape index: {}]  }
   0x1   :  { %9 = vsyncpa [#allocation3 + $0x1], 0 }
   0x2   :  { %10 = vsyncpa [#allocation6], 0 }
   0x3   :  { %11 = vsyncpa [#allocation4], 0 }
   0x4   :  { %13 = vsyncpa [#allocation4 + $0x1], 0  ;;  %s550_s9 = smov 0   ;;  %s552_s10 = smov 0  }
   0x5   :  { %s554_s11 = smov 0   ;;  %s556_s12 = smov 0  }
   0x6 LB: > { %s571_s13 = sadd.s32 4294967295, %s528_s12   ;;  %s333_s14 = sadd.s32 4294967294, %s528_s12   ;;  %s528_s12 = sphi %s556_s12, %s732_s12   ;;  %s524_s11 = sphi %s554_s11, %s731_s11   ;;  %s520_s10 = sphi %s552_s10, %s730_s10   ;;  %s516_s9 = sphi %s550_s9, %s729_s9  }
   0x7   : > { %p39_p0 = scmp.ne.s32.totalorder %s520_s10, %s516_s9  ;;  %p711_p1 = scmp.eq.s32.totalorder %s571_s13, 0 }
   0x8   : > { %p90_p3 = scmp.eq.s32.totalorder %s333_s14, 1  ;;  %p334_p5 = scmp.ge.s32.totalorder %s528_s12, 1 }
   0x9   : > { %p580_p4 = por %p711_p1, %p39_p0  ;;  %p97_p7 = scmp.lt.s32.totalorder %s528_s12, 3 }
   0xa   : > { %p585_p6 = por %p90_p3, %p39_p0  ;;  %s530_s18 = smov [#allocation5]  }
   0xb   : > { %s715_s15 = scalar_select %p580_p4, 1, 0 }
   0xc   : > { %s716_s16 = scalar_select %p585_p6, 1, 0 }
   0xd   : > { %p590_p8 = pnand %p334_p5, %p97_p7  ;;  %s109_s19 = sshll.u32 %s530_s18, 4  ;;  %s110_s19 = int_to_ptr.vmem [resolvable:$true] %s109_s19 }
   0xe   : > { %s604_s21 = sadd.s32 1, %s528_s12   ;;  %s26_s22 = sadd.s32 1, %s524_s11 }
   0xf   : > { %s717_s17 = scalar_select %p590_p8, 1, 0 }
  0x10   : > { %p355_p9 = pneg %p590_p8  ;;  %s23_s23 = ssub.s32 %s528_s12, %s604_s21 }
  0x11   : > { %s417_s24 = scalar_lea.vmem %s110_s19, 1024  ;;  %p425_p5 = scmp.lt.s32.totalorder %s110_s19, %s110_s19 }
  0x12   : > { %p599_p11 = pnand %p355_p9, %p711_p1  ;;  %p418_p13 = scmp.ne.s32.totalorder %s110_s19, %s417_s24 }
  0x13   : > { %p426_p7 = scmp.lt.s32.totalorder %s417_s24, %s417_s24 }
  0x14   : > { %p408_p12 = pneg %p599_p11 }
  0x15   : > { %p427_p10 = por %p426_p7, %p425_p5 }
  0x16   : > { %p420_p0 = pnand %p418_p13, %p408_p12 }
  0x18   : > { %p421_p3 = pneg %p420_p0 }
  0x1a   : > { %p428_p2 = pnand %p427_p10, %p421_p3 }
  0x1c   : > { %431 = shalt.err (!%p428_p2)
}
  0x1d   : > { %s531_s25 = smov 128   ;;  %s532_s26 = smov 8  }
  0x1e   : > { %358 = dma.hbm_to_vmem [thread:$0]  (!%p599_p11), %s709_s1, 1024, %s110_s19, [#allocation6], %s531_s25, %s531_s25, %s532_s26  }
  0x1f   : > { %p24_p9 = scmp.eq.s32.totalorder %s23_s23, 0  ;;  %p33_p12 = scmp.ne.s32.totalorder %s524_s11, %s520_s10 }
  0x20   : > { %p34_p10 = scmp.eq.s32.totalorder %s528_s12, 0  ;;  %p368_p2 = scmp.lt.s32.totalorder %s528_s12, 2 }
  0x21   : > { %s621_s29 = scalar_select %p24_p9, %s524_s11, %s26_s22  }
  0x22   : > { %p35_p13 = por %p34_p10, %p33_p12  ;;  %p719_p0 = scmp.eq.s32.totalorder %s571_s13, 1 }
  0x23   : > { %s123_s3 = sand.u32 1, %s524_s11   ;;  %s338_s4 = sshll.u32 %s528_s12, 7 }
  0x24   : > { %p625_p3 = por %p719_p0, %p33_p12  ;;  %s337_s5 = sshll.u32 %s123_s3, 3 }
  0x25   : > { %s634_s8 = scalar_lea.hbm %s708_s0, %s338_s4  ;;  %s127_s14 = scalar_lea.vmem [#allocation2], %s337_s5 }
  0x26   : > { %s720_s30 = scalar_select %p625_p3, 1, 0 }
  0x27   : > { %s134_s18 = sshll.u32 %s127_s14, 4  ;;  %p636_p11 = pnand %p368_p2, %p35_p13  ;;  %s135_s18 = int_to_ptr.vmem [resolvable:$true] %s134_s18 }
  0x28   : > { %s124_s20 = scalar_lea.sflag [#allocation3], %s123_s3  ;;  %s432_s22 = scalar_lea.hbm %s634_s8, 128 }
  0x29   : > { %p433_p5 = scmp.ne.s32.totalorder %s634_s8, %s432_s22  ;;  %p434_p7 = pneg %p636_p11 }
  0x2a   : > { %s437_s25 = scalar_lea.hbm %s708_s0, 256  ;;  %p438_p10 = scmp.lt.s32.totalorder %s634_s8, %s708_s0 }
  0x2b   : > { %p435_p9 = pnand %p434_p7, %p433_p5  ;;  %p439_p2 = scmp.lt.s32.totalorder %s437_s25, %s432_s22 }
  0x2d   : > { %p436_p12 = pneg %p435_p9  ;;  %p440_p13 = por %p439_p2, %p438_p10 }
  0x2f   : > { %p441_p0 = pnand %p440_p13, %p436_p12 }
  0x31   : > { %444 = shalt.err (!%p441_p0)
}
  0x32   : > { %s445_s28 = scalar_lea.vmem %s135_s18, 128  ;;  %s533_s3 = smov [#allocation2]  }
  0x33   : > { %p446_p1 = scmp.ne.s32.totalorder %s135_s18, %s445_s28  ;;  %s450_s4 = sshll.u32 %s533_s3, 4  ;;  %s451_s4 = int_to_ptr.vmem [resolvable:$false] %s450_s4 }
  0x34   : > { %s452_s5 = scalar_lea.vmem %s451_s4, 256  ;;  %p453_p5 = scmp.lt.s32.totalorder %s135_s18, %s451_s4 }
  0x35   : > { %p448_p6 = pnand %p446_p1, %p434_p7  ;;  %p454_p9 = scmp.lt.s32.totalorder %s452_s5, %s445_s28 }
  0x37   : > { %p449_p3 = pneg %p448_p6  ;;  %p455_p4 = por %p454_p9, %p453_p5 }
  0x39   : > { %p456_p8 = pnand %p455_p4, %p449_p3 }
  0x3b   : > { %459 = shalt.err (!%p456_p8)
}
  0x3c   : > { %362 = dma.hbm_to_vmem [thread:$0]  (!%p636_p11), %s634_s8, 128, %s135_s18, %s124_s20  }
  0x3d   : > { %p722_p12 = scmp.ne.s32.totalorder %s717_s17, 0 }
  0x3e   : > { %s657_s6 = sand.u32 (!%p722_p12), 1, %s520_s10   ;;  %p723_p1 = scmp.ne.s32.totalorder (!%p722_p12), %s715_s15, 0 }
  0x3f   : > { %143 = sbr.rel (%p722_p12) target bundleno = 109 (0x6d), region = 28  ;;  %s340_s7 = sshll.u32 (!%p722_p12), %s657_s6, 3 }
  0x40   : > { %s146_s14 = scalar_lea.sflag (!%p722_p12), [#allocation3], %s657_s6  ;;  %s149_s22 = scalar_lea.vmem (!%p722_p12), [#allocation2], %s340_s7 }
  0x44   : > { %503 = dma.done.wait (%p723_p1), %s146_s14, 128  }
  0x45   : > { %505 = vsyncadd (%p723_p1), %s146_s14, 4294967168  ;;  %p724_p4 = scmp.eq.s32.totalorder %s571_s13, 0 }
  0x47   : > { %507 = dma.done.wait (%p724_p4), [#allocation6], 1024   ;;  %p725_p6 = pmov %p724_p4 }
  0x48   : > { %v176_v0 = vlaneseq  ;;  %v174_v7 = vld [vmem:[%s149_s22] sm:$0xff]  ;;  %v175_v8 = vld [vmem:[#allocation5] sm:$0xff]  ;;  %v183_v9 = vld [vmem:[#allocation5 + $0x8] sm:$0xff]  ;;  %s173_s15 = scalar_lea.vmem [#allocation7], %s340_s7  ;;  %s344_s8 = sshll.u32 %s571_s13, 7 }
  0x49   : > { %509 = vsyncadd (%p725_p6), [#allocation6], 4294966272  ;;  %v191_v13 = vld [vmem:[#allocation5 + $0x10] sm:$0xff]  ;;  %v199_v16 = vld [vmem:[#allocation5 + $0x18] sm:$0xff]  ;;  %s253_s17 = sshll.u32 %s173_s15, 4  ;;  %s251_s20 = scalar_lea.hbm %s710_s2, %s344_s8  ;;  %s254_s17 = int_to_ptr.vmem [resolvable:$true] %s253_s17 }
  0x4a   : > { %v177_v1 = vshrl.u32 %v176_v0, 7  ;;  %v207_v22 = vld [vmem:[#allocation5 + $0x20] sm:$0xff]  ;;  %v215_v27 = vld [vmem:[#allocation5 + $0x28] sm:$0xff]  ;;  %v223_v31 = vld [vmem:[#allocation5 + $0x30] sm:$0xff]  ;;  %s240_s23 = scalar_lea.sflag [#allocation4], %s657_s6  ;;  %s460_s24 = scalar_lea.vmem %s254_s17, 128 }
  0x4b   : > { %v231_v35 = vld [vmem:[#allocation5 + $0x38] sm:$0xff]  ;;  %p461_p8 = scmp.ne.s32.totalorder %s254_s17, %s460_s24  ;;  %p726_p3 = scmp.ne.s32.totalorder %s720_s30, 0 }
  0x4c   : > { %v178_v2 = vsub.s32 0, %v177_v1  ;;  %v186_v3 = vsub.s32 1, %v177_v1  ;;  %v194_v4 = vsub.s32 2, %v177_v1  ;;  %v202_v5 = vsub.s32 3, %v177_v1  ;;  %s534_s25 = smov [#allocation7]  }
  0x4d   : > { %v210_v6 = vsub.s32 4, %v177_v1  ;;  %v218_v10 = vsub.s32 5, %v177_v1  ;;  %v226_v17 = vsub.s32 6, %v177_v1  ;;  %v234_v26 = vsub.s32 7, %v177_v1  ;;  %p462_p11 = pnand %p461_p8, %p726_p3  ;;  %s464_s26 = sshll.u32 %s534_s25, 4  ;;  %s465_s26 = int_to_ptr.vmem [resolvable:$false] %s464_s26 }
  0x4e   : > { %v179_v11 = vrot.slane %v174_v7, %v178_v2  ;;  %v187_v12 = vrot.slane %v174_v7, %v186_v3  ;;  %v195_v14 = vrot.slane %v174_v7, %v194_v4  ;;  %v203_v15 = vrot.slane %v174_v7, %v202_v5  ;;  %s466_s27 = scalar_lea.vmem %s465_s26, 256  ;;  %p467_p10 = scmp.lt.s32.totalorder %s254_s17, %s465_s26 }
  0x4f   : > { %v211_v21 = vrot.slane %v174_v7, %v210_v6  ;;  %v219_v25 = vrot.slane %v174_v7, %v218_v10  ;;  %v227_v30 = vrot.slane %v174_v7, %v226_v17  ;;  %v235_v34 = vrot.slane %v174_v7, %v234_v26  ;;  %p463_p7 = pneg %p462_p11  ;;  %p468_p2 = scmp.lt.s32.totalorder %s466_s27, %s460_s24 }
  0x50   : > { %v180_v18 = vmul.f32 %v179_v11, %v175_v8  ;;  %v188_v19 = vmul.f32 %v187_v12, %v183_v9  ;;  %v196_v20 = vmul.f32 %v195_v14, %v191_v13  ;;  %v204_v24 = vmul.f32 %v203_v15, %v199_v16 }
  0x51   : > { %v212_v29 = vmul.f32 %v211_v21, %v207_v22  ;;  %v220_v33 = vmul.f32 %v219_v25, %v215_v27  ;;  %v228_v37 = vmul.f32 %v227_v30, %v223_v31  ;;  %v236_v39 = vmul.f32 %v235_v34, %v231_v35  ;;  %p469_p13 = por %p468_p2, %p467_p10 }
  0x52   : > { %v189_v23 = vadd.f32 %v188_v19, %v180_v18 }
  0x53   : > { %p470_p0 = pnand %p469_p13, %p463_p7 }
  0x54   : > { %v197_v28 = vadd.f32 %v196_v20, %v189_v23 }
  0x56   : > { %v205_v32 = vadd.f32 %v204_v24, %v197_v28 }
  0x58   : > { %v213_v36 = vadd.f32 %v212_v29, %v205_v32 }
  0x5a   : > { %v221_v38 = vadd.f32 %v220_v33, %v213_v36 }
  0x5c   : > { %v229_v40 = vadd.f32 %v228_v37, %v221_v38 }
  0x5e   : > { %v237_v41 = vadd.f32 %v236_v39, %v229_v40 }
  0x60   : > { %238 = vst [vmem:[%s173_s15] sm:$0xff] %v237_v41 }
  0x61   : > { %473 = shalt.err (!%p470_p0)
}
  0x62   : > { %s474_s13 = scalar_lea.hbm %s251_s20, 128  ;;  %s478_s4 = scalar_lea.hbm %s710_s2, 256 }
  0x63   : > { %p475_p5 = scmp.ne.s32.totalorder %s251_s20, %s474_s13  ;;  %p479_p1 = scmp.lt.s32.totalorder %s251_s20, %s710_s2 }
  0x64   : > { %p480_p4 = scmp.lt.s32.totalorder %s478_s4, %s474_s13 }
  0x65   : > { %p476_p9 = pnand %p475_p5, %p726_p3 }
  0x66   : > { %p481_p6 = por %p480_p4, %p479_p1 }
  0x67   : > { %p477_p12 = pneg %p476_p9 }
  0x69   : > { %p482_p8 = pnand %p481_p6, %p477_p12 }
  0x6b   : > { %485 = shalt.err (!%p482_p8)
}
  0x6c   : > { %353 = dma.vmem_to_hbm [thread:$0]  (%p726_p3), %s254_s17, 128, %s251_s20, %s240_s23  }
  0x6d PF: > { %s265_s7 = sand.u32 1, %s516_s9   ;;  %p727_p11 = scmp.ne.s32.totalorder %s716_s16, 0 }
  0x6e   : > { %p728_p7 = scmp.ge.s32.totalorder %s528_s12, 2  ;;  %s266_s14 = scalar_lea.sflag [#allocation4], %s265_s7 }
  0x70   : > { %p364_p10 = pnand %p728_p7, %p727_p11 }
  0x72   : > { %p365_p2 = pneg %p364_p10 }
  0x74   : > { %511 = dma.done.wait (%p365_p2), %s266_s14, 128  }
  0x75   : > { %513 = vsyncadd (%p365_p2), %s266_s14, 4294967168  ;;  %p16_p13 = scmp.ge.s32.totalorder %s604_s21, 4   ;;  %s729_s9 = smov %s520_s10 }
  0x76   : > { %s730_s10 = smov %s524_s11  ;;  %s731_s11 = smov %s621_s29 }
  0x77   : > { %s732_s12 = smov %s604_s21  ;;  %18 = sbr.rel (!%p16_p13) target bundleno = 6 (0x6), region = 84 }
  0x7c   :  { %271 = vsyncpa [#allocation3], 1 }
  0x7d   :  { %273 = vsyncpa [#allocation3 + $0x1], 1 }
  0x7e   :  { %274 = vsyncpa [#allocation6], 1 }
  0x7f   :  { %275 = vsyncpa [#allocation4], 1 }
  0x80   :  { %277 = vsyncpa [#allocation4 + $0x1], 1 }

</bundles_post_ra>
